<compile_context>
chip_gen: v6e
topology: v6e:2x2x1
jax: 0.10.0
libtpu: 0.0.40
codegen_flags: <defaults>
</compile_context>

<pallas_src>
import functools

import jax
import jax.numpy as jnp
from jax.experimental import pallas as pl
from jax.experimental.pallas import tpu as pltpu

_QMIN = 0.0
_QMAX = 255.0
_EPS = float(jnp.finfo(jnp.float32).eps)


def _qdq_kernel(params_ref, x_ref, o_ref):
    """Elementwise per-tensor affine quint8 quantize -> dequantize on one tile.

    params_ref (SMEM, f32[3]) = [scale, zero_point, inv_scale] (global, per-tensor).
    """
    scale = params_ref[0]
    zp = params_ref[1]
    inv_scale = params_ref[2]

    x = x_ref[...].astype(jnp.float32)
    # quantize: round-half-to-even, shift by zero-point, clamp to [0, 255];
    # then dequantize back to float.
    q = jnp.clip(jnp.round(x * inv_scale) + zp, _QMIN, _QMAX)
    o_ref[...] = ((q - zp) * scale).astype(o_ref.dtype)


@functools.partial(jax.jit, static_argnames=())
def model_quant_dequant(x):
    """JAX wrapper mirroring Model_Quant_Dequant.forward (quant -> dequant)."""
    orig_shape = x.shape
    orig_dtype = x.dtype

    # ---- per-tensor quant params: global reduce in the wrapper (MinMaxObserver) ----
    xf32 = x.astype(jnp.float32)
    mn = jnp.minimum(jnp.min(xf32), 0.0)   # quint8 affine range must include zero
    mx = jnp.maximum(jnp.max(xf32), 0.0)
    scale = jnp.maximum((mx - mn) / (_QMAX - _QMIN), _EPS)
    zp = jnp.clip(_QMIN - jnp.round(mn / scale), _QMIN, _QMAX)
    inv_scale = 1.0 / scale
    params = jnp.stack([scale, zp, inv_scale]).astype(jnp.float32)

    # ---- lane-dense slab layout: (rows, lane) with lane a multiple of 128 ----
    flat = x.reshape(-1)
    n = flat.shape[0]
    lane = 128
    for cand in (1024, 512, 256, 128):
        if n % cand == 0:
            lane = cand
            break
    pad = (-n) % lane
    if pad:
        flat = jnp.pad(flat, (0, pad))
    x2d = flat.reshape(-1, lane)
    rows = x2d.shape[0]

    # ~2 MiB f32 per input tile; with in+out tiles and double-buffering this
    # stays well under the scoped-VMEM defaults on all of v5e / v6e / v7x.
    target_rows = max(8, (((512 * 1024) // lane) // 8) * 8)
    tile_rows = rows if rows <= target_rows else target_rows
    grid = (pl.cdiv(rows, tile_rows),)

    elem_bytes = jnp.dtype(orig_dtype).itemsize
    nbytes = rows * lane * elem_bytes

    out2d = pl.pallas_call(
        _qdq_kernel,
        out_shape=jax.ShapeDtypeStruct((rows, lane), orig_dtype),
        grid=grid,
        in_specs=[
            pl.BlockSpec(memory_space=pltpu.MemorySpace.SMEM),        # qparams
            pl.BlockSpec((tile_rows, lane), lambda i: (i, 0)),        # input tile
        ],
        out_specs=pl.BlockSpec((tile_rows, lane), lambda i: (i, 0)),
        compiler_params=pltpu.CompilerParams(
            dimension_semantics=("parallel",),
            vmem_limit_bytes=32 * 1024 * 1024,
        ),
        cost_estimate=pl.CostEstimate(
            flops=7 * rows * lane,
            transcendentals=0,
            bytes_accessed=2 * nbytes,
        ),
    )(params, x2d)

    out = out2d.reshape(-1)
    if pad:
        out = out[:n]
    return out.reshape(orig_shape)


def _reference(x):
    """Plain-JAX reference of the same quantize -> dequantize semantics."""
    xf = x.astype(jnp.float32)
    mn = jnp.minimum(jnp.min(xf), 0.0)
    mx = jnp.maximum(jnp.max(xf), 0.0)
    scale = jnp.maximum((mx - mn) / (_QMAX - _QMIN), _EPS)
    zp = jnp.clip(_QMIN - jnp.round(mn / scale), _QMIN, _QMAX)
    q = jnp.clip(jnp.round(xf / scale) + zp, _QMIN, _QMAX)
    return ((q - zp) * scale).astype(x.dtype)


if __name__ == "__main__":
    key = jax.random.PRNGKey(0)
    x = jax.random.normal(key, (2, 4, 16, 16), dtype=jnp.float32)  # NCHW

    out = model_quant_dequant(x)
    out = jax.block_until_ready(out)

    ref = _reference(x)
    assert out.shape == x.shape and out.dtype == x.dtype
    assert jnp.allclose(out, ref, atol=1e-6), "mismatch vs reference"
    # quant-dequant error is bounded by ~scale/2
    assert jnp.max(jnp.abs(out - x)) < 0.05

    print("KERNEL_OK")
</pallas_src>

<mosaic_0001>
module attributes {stable_mosaic.version = 11 : i64} {
  func.func @_qdq_kernel(%arg0: i32, %arg1: memref<3xf32, #tpu.memory_space<smem>>, %arg2: memref<2x1024xf32, #tpu.memory_space<vmem>>, %arg3: memref<2x1024xf32, #tpu.memory_space<vmem>>) attributes {dimension_semantics = [#tpu.dimension_semantics<parallel>], iteration_bounds = array<i64: 1>, scalar_prefetch = 0 : i64, scratch_operands = 0 : i64, tpu.core_type = #tpu.core_type<tc>, window_params = [{transform_indices = @transform_0, window_bounds = array<i64: 3>}, {transform_indices = @transform_1, window_bounds = array<i64: 2, 1024>}, {transform_indices = @transform_2, window_bounds = array<i64: 2, 1024>}]} {
    %c0 = arith.constant 0 : index
    %0 = memref.load %arg1[%c0] : memref<3xf32, #tpu.memory_space<smem>>
    %c1 = arith.constant 1 : index
    %1 = memref.load %arg1[%c1] : memref<3xf32, #tpu.memory_space<smem>>
    %c2 = arith.constant 2 : index
    %2 = memref.load %arg1[%c2] : memref<3xf32, #tpu.memory_space<smem>>
    %c0_0 = arith.constant 0 : index
    %c0_1 = arith.constant 0 : index
    %3 = vector.load %arg2[%c0_0, %c0_1] : memref<2x1024xf32, #tpu.memory_space<vmem>>, vector<2x1024xf32>
    %4 = vector.broadcast %2 : f32 to vector<2x1024xf32>
    %5 = arith.mulf %3, %4 : vector<2x1024xf32>
    %6 = math.roundeven %5 : vector<2x1024xf32>
    %7 = vector.broadcast %1 : f32 to vector<2x1024xf32>
    %8 = arith.addf %6, %7 : vector<2x1024xf32>
    %cst = arith.constant 0.000000e+00 : f32
    %cst_2 = arith.constant 2.550000e+02 : f32
    %9 = vector.broadcast %cst : f32 to vector<2x1024xf32>
    %10 = arith.maximumf %9, %8 : vector<2x1024xf32>
    %11 = vector.broadcast %cst_2 : f32 to vector<2x1024xf32>
    %12 = arith.minimumf %11, %10 : vector<2x1024xf32>
    %13 = vector.broadcast %1 : f32 to vector<2x1024xf32>
    %14 = arith.subf %12, %13 : vector<2x1024xf32>
    %15 = vector.broadcast %0 : f32 to vector<2x1024xf32>
    %16 = arith.mulf %14, %15 : vector<2x1024xf32>
    %c0_3 = arith.constant 0 : index
    %c0_4 = arith.constant 0 : index
    %17 = vector.load %arg3[%c0_3, %c0_4] : memref<2x1024xf32, #tpu.memory_space<vmem>>, vector<2x1024xf32>
    tpu.vector_store %arg3[%c0_3, %c0_4], %16 {strides = array<i32>} : memref<2x1024xf32, #tpu.memory_space<vmem>>, vector<2x1024xf32>,
    return
  }
  func.func @transform_0(%arg0: i32) -> i32 {
    %c0_i32 = arith.constant 0 : i32
    %c0_i32_0 = arith.constant 0 : i32
    return %c0_i32 : i32
  }
  func.func @transform_1(%arg0: i32) -> (i32, i32) {
    %c0_i32 = arith.constant 0 : i32
    %c0_i32_0 = arith.constant 0 : i32
    return %arg0, %c0_i32 : i32, i32
  }
  func.func @transform_2(%arg0: i32) -> (i32, i32) {
    %c0_i32 = arith.constant 0 : i32
    %c0_i32_0 = arith.constant 0 : i32
    return %arg0, %c0_i32 : i32, i32
  }
}

</mosaic_0001>

<bundles_post_ra>
// kernel: model_quant_dequant.1
= control target key start
LH: loop header
LB: loop body
LE: loop exit
PB: predicated region body
PF: predicated region fallthrough
CT: control target
= control target key end

     0   :  { %7 = vsyncpa [#allocation3], 0  ;;  %s117_s0 = inlined_call_operand.vmem [shape: f32[3], index: 0, kind: input, shape index: {}]   ;;  %s118_s1 = inlined_call_operand.vmem [shape: f32[2,1024], index: 1, kind: input, shape index: {}]   ;;  %s119_s2 = inlined_call_operand.vmem [shape: f32[2,1024], index: 2, kind: output, shape index: {}]  }
   0x1   :  { %s14_s11 = sshll.u32 %s117_s0, 4  ;;  %s15_s11 = int_to_ptr.vmem [resolvable:$true] %s14_s11 }
   0x2   :  { %s72_s12 = scalar_lea.vmem %s15_s11, 16  ;;  %p77_p1 = scmp.lt.s32.totalorder %s15_s11, %s15_s11 }
   0x3   :  { %p73_p0 = scmp.ne.s32.totalorder %s15_s11, %s72_s12  ;;  %p78_p2 = scmp.lt.s32.totalorder %s72_s12, %s72_s12 }
   0x5   :  { %p79_p3 = por %p78_p2, %p77_p1 }
   0x7   :  { %p80_p4 = pnand %p79_p3, %p73_p0 }
   0x9   :  { %83 = shalt.err (!%p80_p4)
}
   0xa   :  { %s86_s13 = smov [#allocation2]  }
   0xb   :  { %17 = dma.vmem_to_smem %s15_s11, 16, %s86_s13, [#allocation3]  }
   0xc   :  { %84 = dma.done.wait [#allocation3], 16  }
   0xd   :  { %85 = vsyncadd [#allocation3], 4294967280 }
   0xe   :  { %23 = sfence }
   0xf   :  { %s54_s14 = sld [smem:[#allocation2 + $0x2]]  ;;  %v27_v0 = vld [vmem:[%s118_s1] sm:$0xff]  ;;  %v28_v1 = vld [vmem:[%s118_s1 + $0x8] sm:$0xff] }
  0x10   :  { %s53_s18 = sld [smem:[#allocation2 + $0x1]] }
  0x11   :  { %s24_s19 = sld [smem:[#allocation2]] }
  0x15   :  { %v29_v2 = vstv %s54_s14 }
  0x16   :  { %v30_v3 = vmul.f32 %v29_v2, %v27_v0  ;;  %v31_v4 = vmul.f32 %v29_v2, %v28_v1  ;;  %v34_v16 = vstv %s53_s18 }
  0x17   :  { %v43_v25 = vstv %s24_s19 }
  0x18   :  { %v57_v5 = vcvt.f32.s32 %v30_v3  ;;  %v55_v6 = vand.u32 2147483647, %v30_v3  ;;  %v65_v7 = vcvt.f32.s32 %v31_v4  ;;  %v60_v9 = vand.u32 2147483648, %v30_v3 }
  0x19   :  { %v63_v10 = vand.u32 2147483647, %v31_v4  ;;  %v68_v12 = vand.u32 2147483648, %v31_v4 }
  0x1a   :  { %v58_v8 = vcvt.s32.f32 %v57_v5  ;;  %v66_v11 = vcvt.s32.f32 %v65_v7  ;;  %vm56_vm0 = vcmp.lt.f32.partialorder %v55_v6, 8388608.0 }
  0x1b   :  { %vm64_vm1 = vcmp.lt.f32.partialorder %v63_v10, 8388608.0 }
  0x1c   :  { %v59_v13 = vand.u32 2147483647, %v58_v8  ;;  %v67_v14 = vand.u32 2147483647, %v66_v11 }
  0x1e   :  { %v61_v15 = vor.u32 %v60_v9, %v59_v13  ;;  %v69_v17 = vor.u32 %v68_v12, %v67_v14 }
  0x20   :  { %v62_v18 = vsel %vm56_vm0, %v61_v15, %v30_v3  ;;  %v70_v20 = vsel %vm64_vm1, %v69_v17, %v31_v4 }
  0x21   :  { %v35_v19 = vadd.f32 %v62_v18, %v34_v16  ;;  %v36_v21 = vadd.f32 %v70_v20, %v34_v16 }
  0x23   :  { %v37_v22 = vmax.f32 %v35_v19, 0.0  ;;  %v38_v23 = vmax.f32 %v36_v21, 0.0 }
  0x25   :  { %v39_v24 = vmin.f32 %v37_v22, 255.0  ;;  %v40_v26 = vmin.f32 %v38_v23, 255.0 }
  0x27   :  { %v41_v27 = vsub.f32 %v39_v24, %v34_v16  ;;  %v42_v28 = vsub.f32 %v40_v26, %v34_v16 }
  0x29   :  { %v44_v29 = vmul.f32 %v43_v25, %v41_v27  ;;  %v45_v30 = vmul.f32 %v43_v25, %v42_v28 }
  0x2b   :  { %46 = vst [vmem:[%s119_s2] sm:$0xff] %v44_v29  ;;  %47 = vst [vmem:[%s119_s2 + $0x8] sm:$0xff] %v45_v30 }
  0x2c   :  { %52 = vsyncpa [#allocation3], 1 }

</bundles_post_ra>
